<compile_context>
chip_gen: v7x
topology: tpu7x:2x2x1
jax: 0.10.0
libtpu: 0.0.40
codegen_flags: <defaults>
</compile_context>

<pallas_src>
import functools
import math

import jax
import jax.numpy as jnp
from jax import lax
from jax.experimental import pallas as pl
from jax.experimental.pallas import tpu as pltpu


def _attention_kernel(x_ref, wqkv_ref, bqkv_ref, o_ref, qkv_ref, *,
                      batch_tile, seq_len, ep, approx_recip):
    """x_ref:    (bt*S, EP)   input rows of this batch tile (feature dim lane-padded).
    wqkv_ref: (EP, 3*EP)   fused [Wq^T/sqrt(E) | Wk^T | Wv^T], each chunk lane-aligned.
    bqkv_ref: (1, 3*EP)    fused biases (Q chunk pre-scaled).
    o_ref:    (bt*S, EP)   lane-dense output rows.
    qkv_ref:  (bt*S, 3*EP) VMEM scratch for the fused projection."""
    S, EP = seq_len, ep
    x = x_ref[...]                                        # native dtype (f32 / bf16)

    # Fused Q/K/V projection: one wide MXU matmul (K and N lane-aligned),
    # f32 accumulation, bias add; operands go back to the input dtype for the
    # attention matmuls (no-op for f32, 2x MXU rate for bf16).
    qkv = lax.dot_general(
        x, wqkv_ref[...],
        dimension_numbers=(((1,), (0,)), ((), ())),
        preferred_element_type=jnp.float32) + bqkv_ref[...]        # (bt*S, 3EP) f32
    qkv_ref[...] = qkv.astype(qkv_ref.dtype)

    # Attention per batch element.  pl.loop bounds the live set to one (S, S)
    # tile (a static Python `for` would keep every iteration's scores live).
    @pl.loop(0, batch_tile, unroll=bool(batch_tile <= 2))
    def _(b):
        r0 = pl.multiple_of(b * S, S)
        q = qkv_ref[pl.ds(r0, S), 0:EP]              # (S, EP)  pre-scaled by 1/sqrt(E)
        k = qkv_ref[pl.ds(r0, S), EP:2 * EP]         # (S, EP)
        v = qkv_ref[pl.ds(r0, S), 2 * EP:3 * EP]     # (S, EP)

        # scores[i, j] = sum_e q[i, e] * k[j, e]  (contract on last dims, no k.T).
        # Padded feature columns are zero in both q and k, so they contribute 0.
        scores = lax.dot_general(
            q, k,
            dimension_numbers=(((1,), (1,)), ((), ())),
            preferred_element_type=jnp.float32)                    # (S, S) f32

        # Numerically stable softmax, kept in f32 (v5e has no bf16 VPU/EUP path).
        m = jnp.max(scores, axis=-1, keepdims=True)
        p = jnp.exp(scores - m)
        denom = jnp.sum(p, axis=-1, keepdims=True)
        if approx_recip:
            w = p * pl.reciprocal(denom, approx=True)   # EUP vrcp (slot otherwise idle)
        else:
            w = p / denom                               # exact path for f32 validation

        out = lax.dot_general(
            w.astype(v.dtype), v,
            dimension_numbers=(((1,), (0,)), ((), ())),
            preferred_element_type=jnp.float32)                    # (S, EP) f32

        o_ref[pl.ds(r0, S), :] = out.astype(o_ref.dtype)


def enhanced_self_attention(x, wq_t, bq, wk_t, bk, wv_t, bv, *,
                            batch_tile=None, approx_softmax_recip=None):
    """x: (B, S, E). wq_t/wk_t/wv_t: (E, E) pre-transposed nn.Linear weights
    (projection is x @ W^T == x @ w_t). bq/bk/bv: (1, E). Returns (B, S, E)."""
    B, S, E = x.shape
    dtype = x.dtype
    inv_scale = 1.0 / math.sqrt(E)

    # Lane-align each fused Q/K/V chunk: pad E up to EP = round_up(E, 128) so the
    # chunks start at 128-lane tile boundaries and all loads/stores are lane-dense.
    EP = ((E + 127) // 128) * 128
    pe = EP - E

    def pad_w(w):  # (E, E) -> (EP, EP), zero-padded
        return jnp.pad(w, ((0, pe), (0, pe))) if pe else w

    def pad_b(b):  # (1, E) -> (1, EP), zero-padded
        return jnp.pad(b, ((0, 0), (0, pe))) if pe else b

    # Fuse the three projections into one (EP, 3*EP) weight / (1, 3*EP) bias and
    # fold the attention scale into the Q chunk (free at runtime).
    wqkv = jnp.concatenate([pad_w(wq_t * inv_scale), pad_w(wk_t), pad_w(wv_t)], axis=1)
    bqkv = jnp.concatenate([pad_b(bq * inv_scale), pad_b(bk), pad_b(bv)], axis=1)

    # Default: one batch element per grid step -> grid=(B,), so the 'parallel'
    # axis can shard across v7x's two TensorCores; single-TC chips just loop.
    bt = (1 if B > 1 else B) if batch_tile is None else min(batch_tile, B)
    assert B % bt == 0, "batch_tile must divide batch"
    min_sublane = 16 if dtype == jnp.bfloat16 else 8
    assert (bt * S) % min_sublane == 0, (
        f"batch_tile*seq_len ({bt * S}) must be a multiple of {min_sublane} for {dtype}")
    grid = (B // bt,)

    if approx_softmax_recip is None:
        # Approx EUP reciprocal only when the output is bf16 anyway.
        approx_softmax_recip = dtype == jnp.bfloat16

    # Fold batch into rows (free XLA reshape) and pad the feature dim lane-dense.
    x2d = x.reshape(B * S, E)
    if pe:
        x2d = jnp.pad(x2d, ((0, 0), (0, pe)))                       # (B*S, EP)

    kernel = functools.partial(
        _attention_kernel, batch_tile=bt, seq_len=S, ep=EP,
        approx_recip=approx_softmax_recip)

    out2d = pl.pallas_call(
        kernel,
        out_shape=jax.ShapeDtypeStruct((B * S, EP), dtype),
        grid=grid,
        in_specs=[
            pl.BlockSpec((bt * S, EP), lambda i: (i, 0)),           # x rows of this tile
            pl.BlockSpec((EP, 3 * EP), lambda i: (0, 0),
                         pipeline_mode=pl.Buffered(1)),             # fused weights, resident
            pl.BlockSpec((1, 3 * EP), lambda i: (0, 0),
                         pipeline_mode=pl.Buffered(1)),             # fused bias, resident
        ],
        out_specs=pl.BlockSpec((bt * S, EP), lambda i: (i, 0)),
        scratch_shapes=[pltpu.VMEM((bt * S, 3 * EP), dtype)],
        compiler_params=pltpu.CompilerParams(
            dimension_semantics=("parallel",)),
    )(x2d, wqkv, bqkv)

    # Drop the lane padding (zeros) and restore (B, S, E).
    return out2d[:, :E].reshape(B, S, E)


def _reference(x, wq_t, bq, wk_t, bk, wv_t, bv):
    # Pure-JAX reference mirroring the PyTorch forward.
    E = x.shape[-1]
    q = x @ wq_t + bq
    k = x @ wk_t + bk
    v = x @ wv_t + bv
    scores = jnp.einsum("bqe,bke->bqk", q, k) / math.sqrt(E)
    w = jax.nn.softmax(scores, axis=2)
    return jnp.einsum("bqk,bke->bqe", w, v)


if __name__ == "__main__":
    B, S, E = 2, 8, 32  # batch, sequence_length, embedding_dim

    key = jax.random.PRNGKey(0)
    kx, kq, kbq, kk, kbk, kv, kbv = jax.random.split(key, 7)

    x = jax.random.normal(kx, (B, S, E), dtype=jnp.float32)

    # nn.Linear(E, E) weights are (out, in) = (E, E); we store the transpose so
    # the kernel does x @ W^T as a plain matmul. Matches torch's default init range.
    bound = 1.0 / math.sqrt(E)
    wq = jax.random.uniform(kq, (E, E), jnp.float32, -bound, bound)
    wk = jax.random.uniform(kk, (E, E), jnp.float32, -bound, bound)
    wv = jax.random.uniform(kv, (E, E), jnp.float32, -bound, bound)
    bq = jax.random.uniform(kbq, (1, E), jnp.float32, -bound, bound)
    bk = jax.random.uniform(kbk, (1, E), jnp.float32, -bound, bound)
    bv = jax.random.uniform(kbv, (1, E), jnp.float32, -bound, bound)

    wq_t, wk_t, wv_t = wq.T, wk.T, wv.T

    out = enhanced_self_attention(x, wq_t, bq, wk_t, bk, wv_t, bv)
    out = jax.block_until_ready(out)

    ref = _reference(x, wq_t, bq, wk_t, bk, wv_t, bv)
    assert out.shape == (B, S, E)
    # f32 inputs take the exact-reciprocal softmax path -> tight tolerance.
    assert jnp.allclose(out, ref, atol=1e-4, rtol=1e-4), "mismatch vs reference"

    print("KERNEL_OK")
</pallas_src>

<mosaic_0001>
module attributes {stable_mosaic.version = 11 : i64} {
  func.func @_attention_kernel(%arg0: i32, %arg1: memref<8x128xf32, #tpu.memory_space<vmem>>, %arg2: memref<128x384xf32, #tpu.memory_space<vmem>>, %arg3: memref<1x384xf32, #tpu.memory_space<vmem>>, %arg4: memref<8x128xf32, #tpu.memory_space<vmem>>, %arg5: memref<8x384xf32, #tpu.memory_space<vmem>>) attributes {dimension_semantics = [#tpu.dimension_semantics<parallel>], iteration_bounds = array<i64: 2>, scalar_prefetch = 0 : i64, scratch_operands = 1 : i64, tpu.core_type = #tpu.core_type<tc>, window_params = [{transform_indices = @transform_0, window_bounds = array<i64: 8, 128>}, {pipeline_mode = #tpu.pipeline_mode<synchronous>, transform_indices = @transform_1, window_bounds = array<i64: 128, 384>}, {pipeline_mode = #tpu.pipeline_mode<synchronous>, transform_indices = @transform_2, window_bounds = array<i64: 1, 384>}, {transform_indices = @transform_3, window_bounds = array<i64: 8, 128>}]} {
    %c0 = arith.constant 0 : index
    %c0_0 = arith.constant 0 : index
    %0 = vector.load %arg1[%c0, %c0_0] : memref<8x128xf32, #tpu.memory_space<vmem>>, vector<8x128xf32>
    %c0_1 = arith.constant 0 : index
    %c0_2 = arith.constant 0 : index
    %1 = vector.load %arg2[%c0_1, %c0_2] : memref<128x384xf32, #tpu.memory_space<vmem>>, vector<128x384xf32>
    %cst = arith.constant dense<0.000000e+00> : vector<8x384xf32>
    %2 = tpu.matmul %0, %1, %cst {dimension_numbers = #tpu.dot_dimension_numbers<[1], [0], [0], [1], [0, 0, 1, 1], [], []>} : vector<8x128xf32>, vector<128x384xf32>, vector<8x384xf32> -> vector<8x384xf32>
    %c0_3 = arith.constant 0 : index
    %c0_4 = arith.constant 0 : index
    %3 = vector.load %arg3[%c0_3, %c0_4] : memref<1x384xf32, #tpu.memory_space<vmem>>, vector<1x384xf32>
    %4 = vector.broadcast %3 : vector<1x384xf32> to vector<8x384xf32>
    %5 = arith.addf %2, %4 : vector<8x384xf32>
    %c0_5 = arith.constant 0 : index
    %c0_6 = arith.constant 0 : index
    %6 = vector.load %arg5[%c0_5, %c0_6] : memref<8x384xf32, #tpu.memory_space<vmem>>, vector<8x384xf32>
    tpu.vector_store %arg5[%c0_5, %c0_6], %5 {strides = array<i32>} : memref<8x384xf32, #tpu.memory_space<vmem>>, vector<8x384xf32>,
    %c0_i32 = arith.constant 0 : i32
    %c1_i32 = arith.constant 1 : i32
    %7 = arith.muli %c0_i32, %c1_i32 : i32
    %c0_i32_7 = arith.constant 0 : i32
    %8 = arith.addi %c0_i32_7, %7 : i32
    %c8_i32 = arith.constant 8 : i32
    %9 = arith.muli %8, %c8_i32 : i32
    %10 = tpu.assume_multiple %9, 8 : i32
    %11 = arith.index_cast %10 : i32 to index
    %c0_8 = arith.constant 0 : index
    %12 = vector.load %arg5[%11, %c0_8] : memref<8x384xf32, #tpu.memory_space<vmem>>, vector<8x128xf32>
    %13 = arith.index_cast %10 : i32 to index
    %c128 = arith.constant 128 : index
    %14 = vector.load %arg5[%13, %c128] : memref<8x384xf32, #tpu.memory_space<vmem>>, vector<8x128xf32>
    %15 = arith.index_cast %10 : i32 to index
    %c256 = arith.constant 256 : index
    %16 = vector.load %arg5[%15, %c256] : memref<8x384xf32, #tpu.memory_space<vmem>>, vector<8x128xf32>
    %cst_9 = arith.constant dense<0.000000e+00> : vector<8x8xf32>
    %17 = tpu.matmul %12, %14, %cst_9 {dimension_numbers = #tpu.dot_dimension_numbers<[1], [1], [0], [0], [0, 0, 1, 0], [], []>} : vector<8x128xf32>, vector<8x128xf32>, vector<8x8xf32> -> vector<8x8xf32>
    %cst_10 = arith.constant dense<0xFF800000> : vector<8xf32>
    %18 = vector.multi_reduction <maximumf>, %17, %cst_10 [1] : vector<8x8xf32> to vector<8xf32>
    %19 = vector.shape_cast %18 : vector<8xf32> to vector<8x1xf32>
    %20 = vector.broadcast %19 : vector<8x1xf32> to vector<8x8xf32>
    %21 = arith.subf %17, %20 : vector<8x8xf32>
    %22 = math.exp %21 : vector<8x8xf32>
    %cst_11 = arith.constant dense<0.000000e+00> : vector<8xf32>
    %23 = vector.multi_reduction <add>, %22, %cst_11 [1] : vector<8x8xf32> to vector<8xf32>
    %24 = vector.shape_cast %23 : vector<8xf32> to vector<8x1xf32>
    %25 = vector.broadcast %24 : vector<8x1xf32> to vector<8x8xf32>
    %26 = arith.divf %22, %25 : vector<8x8xf32>
    %cst_12 = arith.constant dense<0.000000e+00> : vector<8x128xf32>
    %27 = tpu.matmul %26, %16, %cst_12 {dimension_numbers = #tpu.dot_dimension_numbers<[1], [0], [0], [1], [0, 0, 1, 1], [], []>} : vector<8x8xf32>, vector<8x128xf32>, vector<8x128xf32> -> vector<8x128xf32>
    %28 = arith.index_cast %10 : i32 to index
    %c0_13 = arith.constant 0 : index
    %29 = vector.load %arg4[%28, %c0_13] : memref<8x128xf32, #tpu.memory_space<vmem>>, vector<8x128xf32>
    tpu.vector_store %arg4[%28, %c0_13], %27 {strides = array<i32>} : memref<8x128xf32, #tpu.memory_space<vmem>>, vector<8x128xf32>,
    %c1_i32_14 = arith.constant 1 : i32
    return
  }
  func.func @transform_0(%arg0: i32) -> (i32, i32) {
    %c0_i32 = arith.constant 0 : i32
    %c0_i32_0 = arith.constant 0 : i32
    return %arg0, %c0_i32 : i32, i32
  }
  func.func @transform_1(%arg0: i32) -> (i32, i32) {
    %c0_i32 = arith.constant 0 : i32
    %c0_i32_0 = arith.constant 0 : i32
    %c0_i32_1 = arith.constant 0 : i32
    return %c0_i32, %c0_i32_0 : i32, i32
  }
  func.func @transform_2(%arg0: i32) -> (i32, i32) {
    %c0_i32 = arith.constant 0 : i32
    %c0_i32_0 = arith.constant 0 : i32
    %c0_i32_1 = arith.constant 0 : i32
    return %c0_i32, %c0_i32_0 : i32, i32
  }
  func.func @transform_3(%arg0: i32) -> (i32, i32) {
    %c0_i32 = arith.constant 0 : i32
    %c0_i32_0 = arith.constant 0 : i32
    return %arg0, %c0_i32 : i32, i32
  }
}

</mosaic_0001>

<bundles_post_ra>
// kernel: tpu_custom_call.1
= control target key start
LH: loop header
LB: loop body
LE: loop exit
PB: predicated region body
PF: predicated region fallthrough
CT: control target
= control target key end

     0   :  { %8 = vsyncpa [#allocation4], 0  ;;  %s1256_s0 = inlined_call_operand.hbm [shape: f32[16,128], index: 0, kind: input, shape index: {}]   ;;  %s1257_s1 = inlined_call_operand.hbm [shape: f32[128,384], index: 1, kind: input, shape index: {}]   ;;  %s1258_s2 = inlined_call_operand.vmem [shape: f32[1,384], index: 2, kind: input, shape index: {}]   ;;  %s1259_s3 = inlined_call_operand.hbm [shape: f32[16,128], index: 3, kind: output, shape index: {}]  }
   0x1   :  { %10 = vsyncpa [#allocation4 + $0x1], 0 }
   0x2   :  { %11 = vsyncpa [#allocation7], 0 }
   0x3   :  { %12 = vsyncpa [#allocation5], 0 }
   0x4   :  { %14 = vsyncpa [#allocation5 + $0x1], 0  ;;  %s1028_s12 = smov 0   ;;  %s1030_s13 = smov 0  }
   0x5   :  { %s1032_s14 = smov 0   ;;  %s1034_s15 = smov 0  }
   0x6 LB: > { %s1049_s16 = sadd.s32 4294967295, %s998_s15   ;;  %s667_s17 = sadd.s32 4294967294, %s998_s15   ;;  %s998_s15 = sphi %s1034_s15, %s1279_s15   ;;  %s994_s14 = sphi %s1032_s14, %s1278_s14   ;;  %s990_s13 = sphi %s1030_s13, %s1277_s13   ;;  %s986_s12 = sphi %s1028_s12, %s1276_s12  }
   0x7   : > { %p40_p0 = scmp.ne.s32.totalorder %s990_s13, %s986_s12  ;;  %p1260_p1 = scmp.eq.s32.totalorder %s1049_s16, 0 }
   0x8   : > { %p112_p3 = scmp.eq.s32.totalorder %s667_s17, 1  ;;  %p668_p5 = scmp.ge.s32.totalorder %s998_s15, 1 }
   0x9   : > { %p1058_p4 = por %p1260_p1, %p40_p0  ;;  %p119_p7 = scmp.lt.s32.totalorder %s998_s15, 3 }
   0xa   : > { %p1063_p6 = por %p112_p3, %p40_p0  ;;  %s1000_s21 = smov [#allocation6]  }
   0xb   : > { %s1263_s18 = scalar_select %p1058_p4, 1, 0 }
   0xc   : > { %s1264_s19 = scalar_select %p1063_p6, 1, 0 }
   0xd   : > { %p1068_p8 = pnand %p668_p5, %p119_p7  ;;  %s131_s22 = sshll.u32 %s1000_s21, 4  ;;  %s1072_s22 = int_to_ptr.vmem [resolvable:$true] %s131_s22 }
   0xe   : > { %s1084_s24 = sadd.s32 1, %s998_s15   ;;  %s27_s25 = sadd.s32 1, %s994_s14 }
   0xf   : > { %s1265_s20 = scalar_select %p1068_p8, 1, 0 }
  0x10   : > { %p812_p9 = pneg %p1068_p8  ;;  %s24_s26 = ssub.s32 %s998_s15, %s1084_s24 }
  0x11   : > { %s870_s29 = scalar_lea.hbm %s1257_s1, 6144 }
  0x12   : > { %p1079_p11 = pnand %p812_p9, %p1260_p1  ;;  %p871_p12 = scmp.ne.s32.totalorder %s1257_s1, %s870_s29 }
  0x13   : > { %p877_p5 = scmp.lt.u32.totalorder %s870_s29, %s1257_s1 }
  0x14   : > { %p872_p13 = pneg %p1079_p11 }
  0x16   : > { %p873_p0 = pnand %p872_p13, %p871_p12 }
  0x18   : > { %p874_p3 = pneg %p873_p0 }
  0x1a   : > { %p879_p7 = pnand %p877_p5, %p874_p3 }
  0x1c   : > { %882 = shalt.err (!%p879_p7)
}
  0x1d   : > { %s883_s7 = scalar_lea.vmem %s1072_s22, 6144  ;;  %p891_p2 = scmp.lt.s32.totalorder %s1072_s22, %s1072_s22 }
  0x1e   : > { %p884_p9 = scmp.ne.s32.totalorder %s1072_s22, %s883_s7  ;;  %p892_p6 = scmp.lt.s32.totalorder %s883_s7, %s883_s7 }
  0x20   : > { %p886_p10 = pnand %p884_p9, %p872_p13  ;;  %p893_p4 = por %p892_p6, %p891_p2 }
  0x22   : > { %p887_p1 = pneg %p886_p10 }
  0x24   : > { %p894_p8 = pnand %p893_p4, %p887_p1 }
  0x26   : > { %897 = shalt.err (!%p894_p8)
}
  0x27   : > { %s1001_s8 = smov 384   ;;  %s1002_s9 = smov 24  }
  0x28   : > { %815 = dma.hbm_to_vmem [thread:$0]  (!%p1079_p11), %s1257_s1, 6144, %s1072_s22, [#allocation7], %s1001_s8, %s1001_s8, %s1002_s9  }
  0x29   : > { %p25_p2 = scmp.eq.s32.totalorder %s24_s26, 0  ;;  %p34_p1 = scmp.ne.s32.totalorder %s994_s14, %s990_s13 }
  0x2a   : > { %p35_p4 = scmp.eq.s32.totalorder %s998_s15, 0  ;;  %p825_p6 = scmp.lt.s32.totalorder %s998_s15, 2 }
  0x2b   : > { %s1115_s17 = scalar_select %p25_p2, %s994_s14, %s27_s25  }
  0x2c   : > { %p36_p8 = por %p35_p4, %p34_p1  ;;  %p1267_p10 = scmp.eq.s32.totalorder %s1049_s16, 1 }
  0x2d   : > { %s148_s27 = sand.u32 1, %s994_s14   ;;  %s672_s28 = sshll.u32 %s998_s15, 7 }
  0x2e   : > { %p1119_p12 = por %p1267_p10, %p34_p1  ;;  %s671_s29 = sshll.u32 %s148_s27, 3 }
  0x2f   : > { %s1128_s4 = scalar_lea.hbm %s1256_s0, %s672_s28  ;;  %s152_s22 = scalar_lea.vmem [#allocation3], %s671_s29 }
  0x30   : > { %s159_s25 = sshll.u32 %s152_s22, 4  ;;  %p1130_p11 = pnand %p825_p6, %p36_p8  ;;  %s1134_s25 = int_to_ptr.vmem [resolvable:$true] %s159_s25 }
  0x31   : > { %s149_s5 = scalar_lea.sflag [#allocation4], %s148_s27  ;;  %s898_s6 = scalar_lea.hbm %s1128_s4, 128 }
  0x32   : > { %p899_p13 = scmp.ne.s32.totalorder %s1128_s4, %s898_s6  ;;  %p900_p0 = pneg %p1130_p11 }
  0x33   : > { %s903_s9 = scalar_lea.hbm %s1256_s0, 256  ;;  %p904_p7 = scmp.lt.u32.totalorder %s1128_s4, %s1256_s0 }
  0x34   : > { %p901_p3 = pnand %p900_p0, %p899_p13  ;;  %p905_p9 = scmp.lt.u32.totalorder %s903_s9, %s898_s6 }
  0x35   : > { %p907_p1 = scmp.lt.u32.totalorder %s898_s6, %s1128_s4 }
  0x36   : > { %p902_p5 = pneg %p901_p3  ;;  %p906_p2 = por %p905_p9, %p904_p7 }
  0x38   : > { %p908_p4 = por %p907_p1, %p906_p2 }
  0x3a   : > { %p909_p6 = pnand %p908_p4, %p902_p5 }
  0x3c   : > { %912 = shalt.err (!%p909_p6)
}
  0x3d   : > { %s913_s27 = scalar_lea.vmem %s1134_s25, 128  ;;  %s1003_s28 = smov [#allocation3]  }
  0x3e   : > { %p914_p8 = scmp.ne.s32.totalorder %s1134_s25, %s913_s27  ;;  %s918_s29 = sshll.u32 %s1003_s28, 4  ;;  %s919_s29 = int_to_ptr.vmem [resolvable:$false] %s918_s29 }
  0x3f   : > { %s920_s23 = scalar_lea.vmem %s919_s29, 256  ;;  %p921_p3 = scmp.lt.s32.totalorder %s1134_s25, %s919_s29 }
  0x40   : > { %p916_p10 = pnand %p914_p8, %p900_p0  ;;  %p922_p7 = scmp.lt.s32.totalorder %s920_s23, %s913_s27 }
  0x42   : > { %p917_p13 = pneg %p916_p10  ;;  %p923_p9 = por %p922_p7, %p921_p3 }
  0x44   : > { %p924_p2 = pnand %p923_p9, %p917_p13 }
  0x46   : > { %927 = shalt.err (!%p924_p2)
}
  0x47   : > { %819 = dma.hbm_to_vmem [thread:$0]  (!%p1130_p11), %s1128_s4, 128, %s1134_s25, %s149_s5  }
  0x48   : > { %p1270_p5 = scmp.ne.s32.totalorder %s1265_s20, 0 }
  0x49   : > { %s1164_s30 = sand.u32 (!%p1270_p5), 1, %s990_s13   ;;  %p1271_p0 = scmp.ne.s32.totalorder (!%p1270_p5), %s1263_s18, 0 }
  0x4a   : > { %168 = sbr.rel (%p1270_p5) target bundleno = 1090 (0x442), region = 32  ;;  %s674_s22 = sshll.u32 (!%p1270_p5), %s1164_s30, 3 }
  0x4b   : > { %s171_s6 = scalar_lea.sflag (!%p1270_p5), [#allocation4], %s1164_s30  ;;  %s1170_s7 = scalar_lea.vmem (!%p1270_p5), [#allocation3], %s674_s22 }
  0x51   : > { %973 = dma.done.wait (%p1271_p0), %s171_s6, 128  }
  0x52   : > { %975 = vsyncadd (%p1271_p0), %s171_s6, 4294967168  ;;  %p1272_p11 = scmp.eq.s32.totalorder %s1049_s16, 0 }
  0x54   : > { %977 = dma.done.wait (%p1272_p11), [#allocation7], 6144   ;;  %p1273_p1 = pmov %p1272_p11 }
  0x55   : > { %v1004_v0 = vmov 0.0   ;;  %v203_v1 = vld [vmem:[#allocation6 + $0x8] sm:$0xff]  ;;  %v206_v2 = vld [vmem:[#allocation6 + $0x20] sm:$0xff]  ;;  %v205_v5 = vld [vmem:[#allocation6 + $0x18] sm:$0xff]  ;;  %vm1005_vm0 = vmmov 0   ;;  %v252_v50 = vlaneseq  ;;  %vm487_vm1 = vcmask 64512  }
  0x56   : > { %979 = vsyncadd (%p1273_p1), [#allocation7], 4294961152  ;;  %331 = vmatprep.mubr.f32.mxu0 %v1004_v0  ;;  %v202_v3 = vld [vmem:[#allocation6] sm:$0xff]  ;;  %v748_v4 = vpack.c.bf16 %v206_v2, %v203_v1  ;;  %v209_v6 = vld [vmem:[#allocation6 + $0x38] sm:$0xff]  ;;  %735 = vmatprep.mubr.msk.f32.mxu1 %vm1005_vm0, %v1004_v0  ;;  %v1006_v1 = vmov 0.0|0.0   ;;  %s200_s4 = scalar_lea.vmem [#allocation8], %s674_s22 }
  0x57   : > { %v212_v7 = vld [vmem:[#allocation6 + $0x50] sm:$0xff]  ;;  %v750_v8 = vpack.c.bf16 %v205_v5, %v202_v3  ;;  %v211_v11 = vld [vmem:[#allocation6 + $0x48] sm:$0xff]  ;;  %v218_v13 = vld [vmem:[#allocation6 + $0x80] sm:$0xff]  ;;  %v1187_v51 = vshrl.u32 %v252_v50, 7  ;;  %780 = vmatprep.subr.bf16.mxu1 %v1006_v1  ;;  %s587_s25 = sshll.u32 %s200_s4, 4  ;;  %s679_s26 = sshll.u32 %s1049_s16, 7  ;;  %s1209_s25 = int_to_ptr.vmem [resolvable:$true] %s587_s25 }
  0x58   : > { %v752_v9 = vpack.c.bf16 %v212_v7, %v209_v6  ;;  %v208_v10 = vld [vmem:[#allocation6 + $0x30] sm:$0xff]  ;;  %v215_v12 = vld [vmem:[#allocation6 + $0x68] sm:$0xff]  ;;  %749 = vmatprep.subr.bf16.mxu0 %v748_v4  ;;  %v214_v16 = vld [vmem:[#allocation6 + $0x60] sm:$0xff]  ;;  %s1214_s9 = scalar_lea.hbm %s1259_s3, %s679_s26  ;;  %s574_s10 = scalar_lea.sflag [#allocation5], %s1164_s30 }
  0x59   : > { %751 = vmatpush1.bf16.msra.mxu0 %v750_v8  ;;  %v754_v14 = vpack.c.bf16 %v211_v11, %v208_v10  ;;  %v756_v15 = vpack.c.bf16 %v218_v13, %v215_v12  ;;  %v217_v17 = vld [vmem:[#allocation6 + $0x78] sm:$0xff]  ;;  %v224_v19 = vld [vmem:[#allocation6 + $0xb0] sm:$0xff]  ;;  %v223_v23 = vld [vmem:[#allocation6 + $0xa8] sm:$0xff]  ;;  %v258_v52 = vsub.s32 1, %v1187_v51  ;;  %v254_v54 = vsub.s32 0, %v1187_v51  ;;  %s928_s11 = scalar_lea.vmem %s1209_s25, 128 }
  0x5a   : > { %753 = vmatprep.subr.bf16.mxu0 %v752_v9  ;;  %v221_v18 = vld [vmem:[#allocation6 + $0x98] sm:$0xff]  ;;  %v758_v20 = vpack.c.bf16 %v217_v17, %v214_v16  ;;  %v220_v22 = vld [vmem:[#allocation6 + $0x90] sm:$0xff]  ;;  %v227_v24 = vld [vmem:[#allocation6 + $0xc8] sm:$0xff]  ;;  %p929_p4 = scmp.ne.s32.totalorder %s1209_s25, %s928_s11  ;;  %s1007_s16 = smov [#allocation8]  }
  0x5b   : > { %v760_v21 = vpack.c.bf16 %v224_v19, %v221_v18  ;;  %v230_v25 = vld [vmem:[#allocation6 + $0xe0] sm:$0xff]  ;;  %v762_v26 = vpack.c.bf16 %v223_v23, %v220_v22  ;;  %v229_v29 = vld [vmem:[#allocation6 + $0xd8] sm:$0xff]  ;;  %v236_v31 = vld [vmem:[#allocation6 + $0x110] sm:$0xff]  ;;  %s932_s27 = sshll.u32 %s1007_s16, 4  ;;  %s933_s27 = int_to_ptr.vmem [resolvable:$false] %s932_s27 }
  0x5c   : > { %v764_v27 = vpack.c.bf16 %v230_v25, %v227_v24  ;;  %v226_v28 = vld [vmem:[#allocation6 + $0xc0] sm:$0xff]  ;;  %v233_v30 = vld [vmem:[#allocation6 + $0xf8] sm:$0xff]  ;;  %v232_v34 = vld [vmem:[#allocation6 + $0xf0] sm:$0xff]  ;;  %p930_p6 = pnand %p929_p4, %p1119_p12  ;;  %s934_s28 = scalar_lea.vmem %s933_s27, 256 }
  0x5d   : > { %755 = vmatpush1.bf16.msra.mxu0 %v754_v14  ;;  %v766_v32 = vpack.c.bf16 %v229_v29, %v226_v28  ;;  %v768_v33 = vpack.c.bf16 %v236_v31, %v233_v30  ;;  %v235_v35 = vld [vmem:[#allocation6 + $0x108] sm:$0xff]  ;;  %v242_v37 = vld [vmem:[#allocation6 + $0x140] sm:$0xff]  ;;  %v241_v41 = vld [vmem:[#allocation6 + $0x138] sm:$0xff]  ;;  %v262_v31 = vsub.s32 2, %v1187_v51  ;;  %p935_p10 = scmp.lt.s32.totalorder %s1209_s25, %s933_s27  ;;  %p936_p13 = scmp.lt.s32.totalorder %s934_s28, %s928_s11 }
  0x5e   : > { %757 = vmatprep.subr.bf16.mxu0 %v756_v15  ;;  %v239_v36 = vld [vmem:[#allocation6 + $0x128] sm:$0xff]  ;;  %v770_v38 = vpack.c.bf16 %v235_v35, %v232_v34  ;;  %v238_v40 = vld [vmem:[#allocation6 + $0x120] sm:$0xff]  ;;  %v245_v42 = vld [vmem:[#allocation6 + $0x158] sm:$0xff]  ;;  %p931_p8 = pneg %p930_p6 }
  0x5f   : > { %v772_v39 = vpack.c.bf16 %v242_v37, %v239_v36  ;;  %v248_v43 = vld [vmem:[#allocation6 + $0x170] sm:$0xff]  ;;  %v774_v44 = vpack.c.bf16 %v241_v41, %v238_v40  ;;  %v247_v47 = vld [vmem:[#allocation6 + $0x168] sm:$0xff]  ;;  %v210_v63 = vld [vmem:[#allocation6 + $0x40] sm:$0xff]  ;;  %p937_p3 = por %p936_p13, %p935_p10 }
  0x60   : > { %v776_v45 = vpack.c.bf16 %v248_v43, %v245_v42  ;;  %v244_v46 = vld [vmem:[#allocation6 + $0x150] sm:$0xff]  ;;  %v207_v62 = vld [vmem:[#allocation6 + $0x28] sm:$0xff]  ;;  %v213_v3 = vld [vmem:[#allocation6 + $0x58] sm:$0xff] }
  0x61   : > { %759 = vmatpush1.bf16.msra.mxu0 %v758_v20  ;;  %v778_v48 = vpack.c.bf16 %v247_v47, %v244_v46  ;;  %v201_v49 = vld [vmem:[%s1170_s7] sm:$0xff]  ;;  %v784_v4 = vpack.c.bf16 %v213_v3, %v210_v63  ;;  %v219_v6 = vld [vmem:[#allocation6 + $0x88] sm:$0xff]  ;;  %v222_v8 = vld [vmem:[#allocation6 + $0xa0] sm:$0xff]  ;;  %p938_p7 = pnand %p937_p3, %p931_p8 }
  0x62   : > { %761 = vmatprep.subr.bf16.mxu0 %v760_v21  ;;  %v1193_v53 = vld [vmem:[%s1258_s2] sm:$0x7]  ;;  %v225_v9 = vld [vmem:[#allocation6 + $0xb8] sm:$0xff]  ;;  %v231_v12 = vld [vmem:[#allocation6 + $0xe8] sm:$0xff] }
  0x63   : > { %v259_v55 = vrot.slane %v1193_v53, %v258_v52  ;;  %v255_v57 = vrot.slane %v1193_v53, %v254_v54  ;;  %v204_v61 = vld [vmem:[#allocation6 + $0x10] sm:$0xff]  ;;  %v790_v10 = vpack.c.bf16 %v225_v9, %v222_v8  ;;  %v234_v14 = vld [vmem:[#allocation6 + $0x100] sm:$0xff]  ;;  %v237_v15 = vld [vmem:[#allocation6 + $0x118] sm:$0xff] }
  0x64   : > { %v781_v2 = vpack.c.bf16 %v207_v62, %v204_v61  ;;  %v216_v5 = vld [vmem:[#allocation6 + $0x70] sm:$0xff]  ;;  %v796_v16 = vpack.c.bf16 %v237_v15, %v234_v14  ;;  %v243_v18 = vld [vmem:[#allocation6 + $0x148] sm:$0xff]  ;;  %v246_v20 = vld [vmem:[#allocation6 + $0x160] sm:$0xff] }
  0x65   : > { %763 = vmatpush1.bf16.msra.mxu0 %v762_v26  ;;  %v787_v7 = vpack.c.bf16 %v219_v6, %v216_v5  ;;  %v228_v11 = vld [vmem:[#allocation6 + $0xd0] sm:$0xff]  ;;  %v249_v21 = vld [vmem:[#allocation6 + $0x178] sm:$0xff] }
  0x66   : > { %765 = vmatprep.subr.bf16.mxu0 %v764_v27  ;;  %782 = vmatpush3.bf16.msra.mxu1 %v781_v2  ;;  %v793_v13 = vpack.c.bf16 %v231_v12, %v228_v11  ;;  %v240_v17 = vld [vmem:[#allocation6 + $0x130] sm:$0xff]  ;;  %v802_v22 = vpack.c.bf16 %v249_v21, %v246_v20 }
  0x67   : > { %783 = vmatprep.subr.bf16.mxu1 %v1006_v1  ;;  %v799_v19 = vpack.c.bf16 %v243_v18, %v240_v17 }
  0x69   : > { %767 = vmatpush1.bf16.msra.mxu0 %v766_v32 }
  0x6a   : > { %769 = vmatprep.subr.bf16.mxu0 %v768_v33  ;;  %785 = vmatpush3.bf16.msra.mxu1 %v784_v4 }
  0x6b   : > { %786 = vmatprep.subr.bf16.mxu1 %v1006_v1 }
  0x6d   : > { %771 = vmatpush1.bf16.msra.mxu0 %v770_v38 }
  0x6e   : > { %773 = vmatprep.subr.bf16.mxu0 %v772_v39  ;;  %788 = vmatpush3.bf16.msra.mxu1 %v787_v7 }
  0x6f   : > { %789 = vmatprep.subr.bf16.mxu1 %v1006_v1 }
  0x71   : > { %775 = vmatpush1.bf16.msra.mxu0 %v774_v44 }
  0x72   : > { %777 = vmatprep.subr.bf16.mxu0 %v776_v45  ;;  %791 = vmatpush3.bf16.msra.mxu1 %v790_v10 }
  0x73   : > { %792 = vmatprep.subr.bf16.mxu1 %v1006_v1 }
  0x75   : > { %779 = vmatpush1.bf16.msra.mxu0 %v778_v48 }
  0x76   : > { %738 = vmatprep.subr.mxu0 %v1004_v0  ;;  %794 = vmatpush3.bf16.msra.mxu1 %v793_v13 }
  0x77   : > { %795 = vmatprep.subr.bf16.mxu1 %v1006_v1 }
  0x78   : > { %332 = vmatmul.mubr.f32.vlgmr.msra.gmra.mrb[0].mxu0 %v201_v49 }
  0x79   : > { %740 = vmatprep.mubr.msk.f32.mxu0 %vm1005_vm0, %v1004_v0 }
  0x7a   : > { %797 = vmatpush3.bf16.msra.mxu1 %v796_v16 }
  0x7b   : > { %798 = vmatprep.subr.bf16.mxu1 %v1006_v1 }
  0x7e   : > { %800 = vmatpush3.bf16.msra.mxu1 %v799_v19 }
  0x7f   : > { %801 = vmatprep.subr.bf16.mxu1 %v1006_v1 }
  0x82   : > { %803 = vmatpush3.bf16.msra.mxu1 %v802_v22 }
  0x83   : > { %743 = vmatprep.subr.mxu1 %v1004_v0 }
  0x85   : > { %736 = vmatmul.mubr.f32.vlgmr.msra.gmra.mrb[0].mxu1 %v201_v49 }
  0x86   : > { %745 = vmatprep.mubr.msk.f32.mxu1 %vm1005_vm0, %v1004_v0  ;;  %v263_v0 = vrot.slane %v1193_v53, %v262_v31 }
 0x14b   : > { %v333_v56 = vpop.f32.mrb[0].mxu0 }
 0x14c   : > { %v335_v58 = vpop.f32.mrb[1].mxu0  ;;  %v334_v60 = vadd.f32 %v333_v56, %v255_v57 }
 0x14d   : > { %v336_v59 = vadd.f32 %v335_v58, %v259_v55 }
 0x14f   : > { %739 = vmatpush3.xpose.msra.mxu0 %v336_v59 }
 0x152   : > { %741 = vmatmul.mubr.f32.vlgmr.msra.gmra.mrb[2].mxu0 %v334_v60 }
 0x158   : > { %v404_v32 = vpop.f32.mrb[0].mxu1 }
 0x159   : > { %v737_v33 = vpop.f32.mrb[1].mxu1  ;;  %v405_v34 = vadd.f32 %v404_v32, %v263_v0 }
 0x15b   : > { %744 = vmatpush3.msra.mxu1 %v405_v34 }
 0x225   : > { %v483_v23 = vpop.f32.mrb[2].mxu0 }
 0x226   : > { %v742_v24 = vpop.f32.mrb[3].mxu0  ;;  %v488_v25 = vsel %vm487_vm1, %v483_v23, -inf }
 0x227   : > { %489 = vmax.xlane.f32.xlu0 %v488_v25 }
 0x2b4   : > { %v490_v26 = vpop.xlane.xlu0 %489 }
 0x2b5   : > { %v491_v27 = vsub.f32 %v483_v23, %v490_v26 }
 0x2b7   : > { %v492_v28 = vmul.f32 1.442695, %v491_v27 }
 0x2b9   : > { %866 = vpow2.f32 %v492_v28 }
 0x2c3   : > { %v867_v29 = vpop.eup %866 }
 0x2c4   : > { %v494_v30 = vsel %vm487_vm1, %v867_v29, 0.0 }
 0x2c5   : > { %495 = vadd.xlane.f32.xlu0 %v494_v30 }
 0x352   : > { %v496_v35 = vpop.xlane.xlu0 %495 }
 0x353   : > { %868 = vrcp.f32 %v496_v35 }
 0x35d   : > { %v869_v36 = vpop.eup %868 }
 0x35e   : > { %v498_v37 = vmul.f32 %v869_v36, %v867_v29 }
 0x360   : > { %746 = vmatmul.mubr.msk.f32.vlgmr.msra.gmra.mrb[2].mxu1 %vm487_vm1, %v498_v37 }
 0x433   : > { %v568_v38 = vpop.f32.mrb[2].mxu1 }
 0x434   : > { %572 = vst [vmem:[%s200_s4] sm:$0xff] %v568_v38  ;;  %v747_v39 = vpop.f32.mrb[3].mxu1 }
 0x435   : > { %941 = shalt.err (!%p938_p7)
}
 0x436   : > { %s942_s29 = scalar_lea.hbm %s1214_s9, 128  ;;  %s946_s22 = scalar_lea.hbm %s1259_s3, 256 }
 0x437   : > { %p943_p9 = scmp.ne.s32.totalorder %s1214_s9, %s942_s29  ;;  %p947_p0 = scmp.lt.u32.totalorder %s1214_s9, %s1259_s3 }
 0x438   : > { %p948_p11 = scmp.lt.u32.totalorder %s946_s22, %s942_s29  ;;  %p950_p4 = scmp.lt.u32.totalorder %s942_s29, %s1214_s9 }
 0x439   : > { %p944_p2 = pnand %p943_p9, %p1119_p12 }
 0x43a   : > { %p949_p1 = por %p948_p11, %p947_p0 }
 0x43b   : > { %p945_p5 = pneg %p944_p2 }
 0x43c   : > { %p951_p6 = por %p950_p4, %p949_p1 }
 0x43e   : > { %p952_p8 = pnand %p951_p6, %p945_p5 }
 0x440   : > { %955 = shalt.err (!%p952_p8)
}
 0x441   : > { %810 = dma.vmem_to_hbm [thread:$0]  (%p1119_p12), %s1209_s25, 128, %s1214_s9, %s574_s10  }
 0x442 PF: > { %s599_s18 = sand.u32 1, %s986_s12   ;;  %p1274_p10 = scmp.ne.s32.totalorder %s1264_s19, 0 }
 0x443   : > { %p1275_p13 = scmp.ge.s32.totalorder %s998_s15, 2  ;;  %s600_s20 = scalar_lea.sflag [#allocation5], %s599_s18 }
 0x445   : > { %p821_p3 = pnand %p1275_p13, %p1274_p10 }
 0x447   : > { %981 = dma.done.wait (!%p821_p3), %s600_s20, 128  }
 0x448   : > { %983 = vsyncadd (!%p821_p3), %s600_s20, 4294967168  ;;  %p17_p7 = scmp.ge.s32.totalorder %s1084_s24, 4   ;;  %s1276_s12 = smov %s990_s13 }
 0x449   : > { %s1277_s13 = smov %s994_s14  ;;  %s1278_s14 = smov %s1115_s17 }
 0x44a   : > { %s1279_s15 = smov %s1084_s24  ;;  %19 = sbr.rel (!%p17_p7) target bundleno = 6 (0x6), region = 82 }
 0x451   :  { %605 = vsyncpa [#allocation4], 1 }
 0x452   :  { %607 = vsyncpa [#allocation4 + $0x1], 1 }
 0x453   :  { %608 = vsyncpa [#allocation7], 1 }
 0x454   :  { %609 = vsyncpa [#allocation5], 1 }
 0x455   :  { %611 = vsyncpa [#allocation5 + $0x1], 1 }

</bundles_post_ra>
